<compile_context>
chip_gen: v6e
topology: v6e:2x2x1
jax: 0.10.0
libtpu: 0.0.40
codegen_flags: <defaults>
</compile_context>

<pallas_src>
import functools

import jax
import jax.numpy as jnp
from jax import lax
from jax.experimental import pallas as pl
from jax.experimental.pallas import tpu as pltpu

EPS = 1e-8  # nn.CosineSimilarity default eps


def _round_up(n, m):
    return ((n + m - 1) // m) * m


def _pick_tiles(M, N, H, itemsize, budget_bytes):
    """Pick (tm, tn) so double-buffered x/y/out tiles fit `budget_bytes`."""
    sub = {1: 32, 2: 16, 4: 8}.get(itemsize, 8)  # dtype sublane tile
    tn = min(_round_up(max(N, 1), 128), 512)
    # Shrink tn if the double-buffered (H, tn) y tile alone eats the budget.
    while tn > 128 and 2 * H * tn * itemsize > budget_bytes // 2:
        tn -= 128
    # Largest tm under budget: per extra tm row we pay
    #   2*H*itemsize (x tile) + 2*tn*4 (out tile) + 2*4 (inv_x) bytes.
    per_row = 2 * H * itemsize + 2 * tn * 4 + 8
    avail = budget_bytes - 2 * H * tn * itemsize - 2 * tn * 4
    tm_budget = max(avail // per_row, sub)
    tm = max(sub, (tm_budget // sub) * sub)
    tm = min(tm, max(_round_up(M, sub), sub), 1024)
    return tm, tn


def _similarity_kernel(x_ref, yt_ref, ix_ref, iy_ref, o_ref):
    # x_ref: (tm, H), yt_ref: (H, tn), ix_ref: (tm, 1) f32, iy_ref: (1, tn) f32
    # Pure MXU matmul with f32 accumulation; rank-1 scaling on the VPU.
    dot = jnp.dot(x_ref[...], yt_ref[...], preferred_element_type=jnp.float32)
    o_ref[...] = dot * ix_ref[...] * iy_ref[...]


def similarity(x, y, temp=0.05, *, cast_to_bf16=False, tm=None, tn=None,
               vmem_budget_bytes=24 << 20):
    """Pallas equivalent of Similarity.forward for the contrastive broadcast
    pattern x: (M, 1, H), y: (1, N, H) (or plain (M, H) / (N, H)).
    Returns the (M, N) cosine-similarity matrix divided by `temp` (float32).
    """
    x2 = x.reshape(-1, x.shape[-1])  # (M, H)
    y2 = y.reshape(-1, y.shape[-1])  # (N, H)
    M, H = x2.shape
    N, _ = y2.shape

    # --- Hoisted norms (always f32, from the original values), 1/temp folded in.
    inv_temp = float(1.0 / temp)
    xf = x2.astype(jnp.float32)
    yf = y2.astype(jnp.float32)
    inv_x = inv_temp * lax.rsqrt(
        jnp.maximum(jnp.sum(xf * xf, axis=-1, keepdims=True), EPS * EPS))  # (M, 1)
    inv_y = lax.rsqrt(
        jnp.maximum(jnp.sum(yf * yf, axis=-1, keepdims=True), EPS * EPS)).T  # (1, N)

    # --- Matmul operands: optional bf16 cast (v6e/v7x MXU rate + half the DMA).
    mm_dtype = x2.dtype
    if cast_to_bf16 and x2.dtype == jnp.float32:
        mm_dtype = jnp.bfloat16
    x_mm = x2.astype(mm_dtype)                 # (M, H)
    yt_mm = y2.astype(mm_dtype).T              # (H, N) one-time wrapper transpose
    itemsize = jnp.dtype(mm_dtype).itemsize

    # --- Tile selection (H- and dtype-aware, VMEM-budgeted).
    tm_auto, tn_auto = _pick_tiles(M, N, H, itemsize, vmem_budget_bytes)
    tm = tm_auto if tm is None else tm
    tn = tn_auto if tn is None else tn

    grid_m = pl.cdiv(M, tm)
    grid_n = pl.cdiv(N, tn)

    # Double-buffered per-step VMEM footprint -> explicit scoped-VMEM limit.
    vmem_bytes = 2 * (tm * H * itemsize + H * tn * itemsize
                      + tm * tn * 4 + tm * 4 + tn * 4)
    vmem_limit = min(max(vmem_bytes + (8 << 20), 32 << 20), 64 << 20)

    cost = pl.CostEstimate(
        flops=2 * M * N * H,
        # x read once; y re-streamed once per grid row of x; small norm vectors;
        # f32 output written once.
        bytes_accessed=itemsize * (M * H + grid_m * N * H)
                       + 4 * (M + N) + 4 * M * N,
        transcendentals=0,
    )

    out = pl.pallas_call(
        _similarity_kernel,
        out_shape=jax.ShapeDtypeStruct((M, N), jnp.float32),
        grid=(grid_m, grid_n),
        in_specs=[
            pl.BlockSpec((tm, H), lambda i, j: (i, 0)),   # x tile, reused over j
            pl.BlockSpec((H, tn), lambda i, j: (0, j)),   # y^T tile
            pl.BlockSpec((tm, 1), lambda i, j: (i, 0)),   # inv_x (temp folded)
            pl.BlockSpec((1, tn), lambda i, j: (0, j)),   # inv_y
        ],
        out_specs=pl.BlockSpec((tm, tn), lambda i, j: (i, j)),
        compiler_params=pltpu.CompilerParams(
            dimension_semantics=("parallel", "parallel"),
            vmem_limit_bytes=vmem_limit),
        cost_estimate=cost,
    )(x_mm, yt_mm, inv_x, inv_y)

    return out
    # TODO(synk): the elementwise (same-shape, non-pairwise) CosineSimilarity
    # call pattern is not covered; the MARS contrastive loss only uses the
    # pairwise unsqueeze pattern handled above.


if __name__ == "__main__":
    key = jax.random.PRNGKey(0)
    kx, ky = jax.random.split(key)

    batch, hidden = 8, 128
    temp = 0.05  # MARSConfig default

    z1 = jax.random.normal(kx, (batch, hidden), dtype=jnp.float32)
    z2 = jax.random.normal(ky, (batch, hidden), dtype=jnp.float32)

    # Same call pattern as the PyTorch module: sim(z1.unsqueeze(1), z2.unsqueeze(0))
    x = z1[:, None, :]  # (M, 1, H)
    y = z2[None, :, :]  # (1, N, H)

    out = similarity(x, y, temp=temp)
    out = jax.block_until_ready(out)

    # Reference in plain JAX, matching torch.cosine_similarity's formula:
    # w12 / sqrt(clamp_min(w1 * w2, eps^2)) / temp
    dot = z1 @ z2.T
    w1 = jnp.sum(z1 * z1, axis=-1, keepdims=True)
    w2 = jnp.sum(z2 * z2, axis=-1, keepdims=True)
    denom = jnp.sqrt(jnp.maximum(w1 * w2.T, EPS * EPS))
    ref = dot / denom / temp
    assert jnp.allclose(out, ref, atol=1e-4, rtol=1e-4), "mismatch vs reference (f32)"

    # Exercise the bf16-matmul fast path (f32 accumulation, f32 norms).
    out_bf16 = jax.block_until_ready(similarity(x, y, temp=temp, cast_to_bf16=True))
    assert jnp.allclose(out_bf16, ref, atol=0.25, rtol=0.02), "mismatch vs reference (bf16)"

    print("KERNEL_OK")
</pallas_src>

<mosaic_0001>
module attributes {stable_mosaic.version = 11 : i64} {
  func.func @_similarity_kernel(%arg0: i32, %arg1: i32, %arg2: memref<8x128xf32, #tpu.memory_space<vmem>>, %arg3: memref<128x128xf32, #tpu.memory_space<vmem>>, %arg4: memref<8x1xf32, #tpu.memory_space<vmem>>, %arg5: memref<1x128xf32, #tpu.memory_space<vmem>>, %arg6: memref<8x128xf32, #tpu.memory_space<vmem>>) attributes {dimension_semantics = [#tpu.dimension_semantics<parallel>, #tpu.dimension_semantics<parallel>], iteration_bounds = array<i64: 1, 1>, scalar_prefetch = 0 : i64, scratch_operands = 0 : i64, tpu.core_type = #tpu.core_type<tc>, window_params = [{transform_indices = @transform_0, window_bounds = array<i64: 8, 128>}, {transform_indices = @transform_1, window_bounds = array<i64: 128, 128>}, {transform_indices = @transform_2, window_bounds = array<i64: 8, 1>}, {transform_indices = @transform_3, window_bounds = array<i64: 1, 128>}, {transform_indices = @transform_4, window_bounds = array<i64: 8, 128>}]} {
    %c0 = arith.constant 0 : index
    %c0_0 = arith.constant 0 : index
    %0 = vector.load %arg2[%c0, %c0_0] : memref<8x128xf32, #tpu.memory_space<vmem>>, vector<8x128xf32>
    %c0_1 = arith.constant 0 : index
    %c0_2 = arith.constant 0 : index
    %1 = vector.load %arg3[%c0_1, %c0_2] : memref<128x128xf32, #tpu.memory_space<vmem>>, vector<128x128xf32>
    %cst = arith.constant dense<0.000000e+00> : vector<8x128xf32>
    %2 = tpu.matmul %0, %1, %cst {dimension_numbers = #tpu.dot_dimension_numbers<[1], [0], [0], [1], [0, 0, 1, 1], [], []>} : vector<8x128xf32>, vector<128x128xf32>, vector<8x128xf32> -> vector<8x128xf32>
    %c0_3 = arith.constant 0 : index
    %c0_4 = arith.constant 0 : index
    %3 = vector.load %arg4[%c0_3, %c0_4] : memref<8x1xf32, #tpu.memory_space<vmem>>, vector<8x1xf32>
    %4 = vector.broadcast %3 : vector<8x1xf32> to vector<8x128xf32>
    %5 = arith.mulf %2, %4 : vector<8x128xf32>
    %c0_5 = arith.constant 0 : index
    %c0_6 = arith.constant 0 : index
    %6 = vector.load %arg5[%c0_5, %c0_6] : memref<1x128xf32, #tpu.memory_space<vmem>>, vector<1x128xf32>
    %7 = vector.broadcast %6 : vector<1x128xf32> to vector<8x128xf32>
    %8 = arith.mulf %5, %7 : vector<8x128xf32>
    %c0_7 = arith.constant 0 : index
    %c0_8 = arith.constant 0 : index
    %9 = vector.load %arg6[%c0_7, %c0_8] : memref<8x128xf32, #tpu.memory_space<vmem>>, vector<8x128xf32>
    tpu.vector_store %arg6[%c0_7, %c0_8], %8 {strides = array<i32>} : memref<8x128xf32, #tpu.memory_space<vmem>>, vector<8x128xf32>,
    return
  }
  func.func @transform_0(%arg0: i32, %arg1: i32) -> (i32, i32) {
    %c0_i32 = arith.constant 0 : i32
    %c0_i32_0 = arith.constant 0 : i32
    return %arg0, %c0_i32 : i32, i32
  }
  func.func @transform_1(%arg0: i32, %arg1: i32) -> (i32, i32) {
    %c0_i32 = arith.constant 0 : i32
    %c0_i32_0 = arith.constant 0 : i32
    return %c0_i32, %arg1 : i32, i32
  }
  func.func @transform_2(%arg0: i32, %arg1: i32) -> (i32, i32) {
    %c0_i32 = arith.constant 0 : i32
    %c0_i32_0 = arith.constant 0 : i32
    return %arg0, %c0_i32 : i32, i32
  }
  func.func @transform_3(%arg0: i32, %arg1: i32) -> (i32, i32) {
    %c0_i32 = arith.constant 0 : i32
    %c0_i32_0 = arith.constant 0 : i32
    return %c0_i32, %arg1 : i32, i32
  }
  func.func @transform_4(%arg0: i32, %arg1: i32) -> (i32, i32) {
    %c0_i32 = arith.constant 0 : i32
    return %arg0, %arg1 : i32, i32
  }
}

</mosaic_0001>

<bundles_post_ra>
// kernel: tpu_custom_call.1
= control target key start
LH: loop header
LB: loop body
LE: loop exit
PB: predicated region body
PF: predicated region fallthrough
CT: control target
= control target key end

     0   :  { %v215_v1 = vmov 0.0   ;;  %vm216_vm0 = vmmov 0   ;;  %v217_v3 = vmov 0   ;;  %s304_s0 = inlined_call_operand.vmem [shape: f32[8,128], index: 0, kind: input, shape index: {}]   ;;  %s305_s1 = inlined_call_operand.vmem [shape: f32[128,8], index: 1, kind: input, shape index: {}]   ;;  %s306_s2 = inlined_call_operand.vmem [shape: f32[8,1], index: 2, kind: input, shape index: {}]   ;;  %s307_s3 = inlined_call_operand.vmem [shape: f32[1,8], index: 3, kind: input, shape index: {}]   ;;  %s308_s4 = inlined_call_operand.hbm [shape: f32[8,8], index: 4, kind: output, shape index: {}]  }
   0x1   :  { %v34_v0 = vld [vmem:[%s305_s1 + $0x78] sm:$0xff]  ;;  %153 = vmatprep.subr.mxu0 %v215_v1  ;;  %v33_v2 = vld [vmem:[%s305_s1 + $0x70] sm:$0xff]  ;;  %185 = vmatprep.mubr.msk.f32.mxu0 %vm216_vm0, %v215_v1  ;;  %v32_v4 = vld [vmem:[%s305_s1 + $0x68] sm:$0xff] }
   0x2   :  { %154 = vmatpush3.msra.mxu0 %v34_v0  ;;  %192 = vset.pattern.permute.xlu0 %v217_v3  ;;  %v31_v5 = vld [vmem:[%s305_s1 + $0x60] sm:$0xff] }
   0x3   :  { %155 = vmatprep.subr.mxu0 %v215_v1  ;;  %v105_v6 = vld [vmem:[%s306_s2] sm:$0xff] }
   0x4   :  { %156 = vmatpush3.msra.mxu0 %v33_v2  ;;  %108 = vperm.xlu0 %192, %v105_v6  }
   0x5   :  { %157 = vmatprep.subr.mxu0 %v215_v1 }
   0x6   :  { %158 = vmatpush3.msra.mxu0 %v32_v4 }
   0x7   :  { %9 = vsyncpa [#allocation3], 0  ;;  %159 = vmatprep.subr.mxu0 %v215_v1  ;;  %v30_v7 = vld [vmem:[%s305_s1 + $0x58] sm:$0xff]  ;;  %v29_v8 = vld [vmem:[%s305_s1 + $0x50] sm:$0xff]  ;;  %s218_s26 = smov [#allocation2]  }
   0x8   :  { %160 = vmatpush3.msra.mxu0 %v31_v5  ;;  %v28_v9 = vld [vmem:[%s305_s1 + $0x48] sm:$0xff]  ;;  %v27_v10 = vld [vmem:[%s305_s1 + $0x40] sm:$0xff]  ;;  %v26_v11 = vld [vmem:[%s305_s1 + $0x38] sm:$0xff]  ;;  %s127_s27 = sshll.u32 %s218_s26, 4  ;;  %s128_s27 = int_to_ptr.vmem [resolvable:$true] %s127_s27 }
   0x9   :  { %161 = vmatprep.subr.mxu0 %v215_v1  ;;  %v25_v12 = vld [vmem:[%s305_s1 + $0x30] sm:$0xff]  ;;  %v24_v13 = vld [vmem:[%s305_s1 + $0x28] sm:$0xff]  ;;  %v23_v14 = vld [vmem:[%s305_s1 + $0x20] sm:$0xff]  ;;  %p198_p1 = scmp.lt.s32.totalorder %s128_s27, %s128_s27 }
   0xa   :  { %162 = vmatpush3.msra.mxu0 %v30_v7  ;;  %v22_v15 = vld [vmem:[%s305_s1 + $0x18] sm:$0xff]  ;;  %v21_v16 = vld [vmem:[%s305_s1 + $0x10] sm:$0xff]  ;;  %v20_v17 = vld [vmem:[%s305_s1 + $0x8] sm:$0xff] }
   0xb   :  { %163 = vmatprep.subr.mxu0 %v215_v1  ;;  %v19_v18 = vld [vmem:[%s305_s1] sm:$0xff]  ;;  %s193_s1 = scalar_lea.vmem %s128_s27, 128 }
   0xc   :  { %164 = vmatpush3.msra.mxu0 %v29_v8  ;;  %v18_v19 = vld [vmem:[%s304_s0] sm:$0xff]  ;;  %p194_p0 = scmp.ne.s32.totalorder %s128_s27, %s193_s1  ;;  %p199_p2 = scmp.lt.s32.totalorder %s193_s1, %s193_s1 }
   0xd   :  { %165 = vmatprep.subr.mxu0 %v215_v1  ;;  %v135_v22 = vld [vmem:[%s307_s3] ss:$0 sm:$0xff] }
   0xe   :  { %166 = vmatpush3.msra.mxu0 %v28_v9  ;;  %p200_p3 = por %p199_p2, %p198_p1 }
   0xf   :  { %167 = vmatprep.subr.mxu0 %v215_v1 }
  0x10   :  { %168 = vmatpush3.msra.mxu0 %v27_v10  ;;  %p201_p4 = pnand %p200_p3, %p194_p0 }
  0x11   :  { %169 = vmatprep.subr.mxu0 %v215_v1 }
  0x12   :  { %170 = vmatpush3.msra.mxu0 %v26_v11 }
  0x13   :  { %171 = vmatprep.subr.mxu0 %v215_v1 }
  0x14   :  { %172 = vmatpush3.msra.mxu0 %v25_v12 }
  0x15   :  { %173 = vmatprep.subr.mxu0 %v215_v1 }
  0x16   :  { %174 = vmatpush3.msra.mxu0 %v24_v13 }
  0x17   :  { %175 = vmatprep.subr.mxu0 %v215_v1 }
  0x18   :  { %176 = vmatpush3.msra.mxu0 %v23_v14 }
  0x19   :  { %177 = vmatprep.subr.mxu0 %v215_v1 }
  0x1a   :  { %178 = vmatpush3.msra.mxu0 %v22_v15 }
  0x1b   :  { %179 = vmatprep.subr.mxu0 %v215_v1 }
  0x1c   :  { %180 = vmatpush3.msra.mxu0 %v21_v16 }
  0x1d   :  { %181 = vmatprep.subr.mxu0 %v215_v1 }
  0x1e   :  { %182 = vmatpush3.msra.mxu0 %v20_v17 }
  0x1f   :  { %183 = vmatprep.subr.mxu0 %v215_v1 }
  0x20   :  { %184 = vmatpush3.msra.mxu0 %v19_v18 }
  0x21   :  { %186 = vmatmul.mubr.f32.vlgmr.msra.gmra.mxu0 %v18_v19 }
  0x7f   :  { %v109_v20 = vpop.permute.xlu0 %108 }
  0xe1   :  { %v101_v21 = vpop.f32.mrf.mxu0 }
  0xe2   :  { %v111_v23 = vmul.f32 %v109_v20, %v101_v21 }
  0xe3   :  { %v187_v24 = vpop.f32.mrf.mxu0 }
  0xe4   :  { %v119_v25 = vmul.f32 %v135_v22, %v111_v23 }
  0xe6   :  { %120 = vst [vmem:[#allocation2] sm:$0xff] %v119_v25 }
  0xe7   :  { %204 = shalt.err (!%p201_p4)
}
  0xe8   :  { %130 = dma.vmem_to_hbm [thread:$0]  %s128_s27, 128, %s308_s4, [#allocation3]  }
  0xe9   :  { %213 = dma.done.wait [#allocation3], 128  }
  0xea   :  { %214 = vsyncadd [#allocation3], 4294967168 }
  0xeb   :  { %134 = vsyncpa [#allocation3], 1 }

</bundles_post_ra>
